<compile_context>
chip_gen: v5e
topology: v5e:2x2
jax: 0.10.0
libtpu: 0.0.40
codegen_flags: <defaults>
</compile_context>

<pallas_src>
import jax
import jax.numpy as jnp
from jax.experimental import pallas as pl
from jax.experimental.pallas import tpu as pltpu


LANE_WIDTH = 1024  # lane-dense last dim for the aligned fast layout (mult. of 128)


def _round_down(x: int, m: int) -> int:
    return (x // m) * m


def _tuned_defaults():
    """(block_bytes, vmem_limit_bytes) chosen per TPU generation."""
    try:
        cap = int(pltpu.get_tpu_info().vmem_capacity_bytes)
    except Exception:  # unknown chip / query unavailable -> assume smallest VMEM
        cap = 64 * 1024 * 1024
    if cap >= 128 * 1024 * 1024:            # v5e / v6e (128 MiB physical VMEM)
        return 8 * 1024 * 1024, 64 * 1024 * 1024
    return 8 * 1024 * 1024, 40 * 1024 * 1024  # v7x (64 MiB physical VMEM)


def _passthrough_kernel(x_ref, o_ref):
    # Identity hot path: the "generated waveform" is the input block.
    o_ref[...] = x_ref[...]


class BaseGeneratorPallas:
    """JAX/Pallas analogue of hw_tts BaseGenerator (no trainable params)."""

    def __init__(self, block_bytes: int | None = None,
                 vmem_limit_bytes: int | None = None,
                 fast_identity: bool = False):
        tuned_block, tuned_vmem = _tuned_defaults()
        self.block_bytes = int(block_bytes) if block_bytes else tuned_block
        self.vmem_limit_bytes = int(vmem_limit_bytes) if vmem_limit_bytes else tuned_vmem
        # True identity: skip the kernel (and all HBM traffic) entirely.
        self.fast_identity = fast_identity
        # BaseGenerator.__init__ registers no parameters.
        self.params = {}
        self._forward = jax.jit(self._forward_impl)

    def num_trainable_parameters(self) -> int:
        return int(sum(int(jnp.size(p)) for p in jax.tree_util.tree_leaves(self.params)))

    def __str__(self):
        return "BaseGeneratorPallas()\nTrainable parameters: {}".format(
            self.num_trainable_parameters()
        )

    def _forward_impl(self, waveform: jnp.ndarray) -> jnp.ndarray:
        """waveform: (B, T) (any dtype / length) -> identical waveform."""
        if self.fast_identity:
            return waveform

        orig_shape = waveform.shape
        n = int(waveform.size)
        itemsize = jnp.dtype(waveform.dtype).itemsize
        # Sublane multiple for this dtype: 8 (f32), 16 (bf16), 32 (int8/fp8).
        sub = max(8, 32 // itemsize)

        # Pick a 2-D view (metadata-only reshape of a contiguous array):
        #  * fully lane-dense (rows, 1024) slab when size allows,
        #  * otherwise the natural (leading-dims, last-dim) view; partial
        #    final blocks are clipped by Pallas — no padding ever.
        if n % LANE_WIDTH == 0:
            slab = waveform.reshape(n // LANE_WIDTH, LANE_WIDTH)
        elif waveform.ndim >= 2:
            slab = waveform.reshape(-1, orig_shape[-1])
        else:
            slab = waveform.reshape(1, n)
        rows, cols = slab.shape

        # Column block: full extent if it fits the per-buffer byte budget at
        # the minimum row tile, else the largest multiple of 128 that does.
        max_cols_budget = max(128, self.block_bytes // (sub * itemsize))
        if cols <= max_cols_budget:
            bc = cols
        else:
            bc = max(128, _round_down(max_cols_budget, 128))

        # Row block: full extent if it fits, else a multiple of the dtype's
        # sublane tile (keeps unmasked full-vreg loads/stores).
        budget_rows = max(sub, self.block_bytes // (bc * itemsize))
        if rows <= budget_rows:
            br = rows
        else:
            br = max(sub, _round_down(budget_rows, sub))

        grid = (pl.cdiv(rows, br), pl.cdiv(cols, bc))

        out = pl.pallas_call(
            _passthrough_kernel,
            out_shape=jax.ShapeDtypeStruct((rows, cols), waveform.dtype),
            grid=grid,
            in_specs=[pl.BlockSpec((br, bc), lambda i, j: (i, j))],
            out_specs=pl.BlockSpec((br, bc), lambda i, j: (i, j)),
            compiler_params=pltpu.CompilerParams(
                dimension_semantics=("parallel", "parallel"),
                vmem_limit_bytes=self.vmem_limit_bytes,
            ),
        )(slab)

        return out.reshape(orig_shape)

    def forward(self, waveform: jnp.ndarray) -> jnp.ndarray:
        return self._forward(waveform)

    __call__ = forward


if __name__ == "__main__":
    key = jax.random.PRNGKey(0)
    k1, k2, k3 = jax.random.split(key, 3)

    # Check 1: default (lane-dense slab, generation-tuned block) configuration
    # on a small waveform batch: batch=2, samples=1024.
    x = jax.random.normal(k1, (2, 1024), dtype=jnp.float32)
    model = BaseGeneratorPallas()
    y = jax.block_until_ready(model(x))
    assert y.shape == x.shape and y.dtype == x.dtype
    assert bool(jnp.array_equal(y, x))
    assert model.num_trainable_parameters() == 0

    # Check 2: misaligned length (T=1003) with tiny blocks — exercises a
    # multi-step grid and Pallas partial-block clipping (no pad/slice path).
    x2 = jax.random.normal(k2, (3, 1003), dtype=jnp.float32)
    model_small = BaseGeneratorPallas(block_bytes=8 * 128 * 4)
    y2 = jax.block_until_ready(model_small(x2))
    assert y2.shape == x2.shape and y2.dtype == x2.dtype
    assert bool(jnp.array_equal(y2, x2))

    # Check 3: bf16 waveform with tiny blocks — exercises the dtype-aware
    # sublane rounding (row tile is a multiple of 16 for bf16).
    x3 = jax.random.normal(k3, (32, 1024), dtype=jnp.float32).astype(jnp.bfloat16)
    model_bf16 = BaseGeneratorPallas(block_bytes=16 * 1024 * 2)
    y3 = jax.block_until_ready(model_bf16(x3))
    assert y3.shape == x3.shape and y3.dtype == x3.dtype
    assert bool(jnp.array_equal(y3, x3))

    # Check 4: fast-identity mode (the truly optimal identity — no kernel).
    model_fast = BaseGeneratorPallas(fast_identity=True)
    y4 = jax.block_until_ready(model_fast(x))
    assert bool(jnp.array_equal(y4, x))

    print("KERNEL_OK")
</pallas_src>

<mosaic_0001>
module attributes {stable_mosaic.version = 11 : i64} {
  func.func @_passthrough_kernel(%arg0: i32, %arg1: i32, %arg2: memref<2x1024xf32, #tpu.memory_space<vmem>>, %arg3: memref<2x1024xf32, #tpu.memory_space<vmem>>) attributes {dimension_semantics = [#tpu.dimension_semantics<parallel>, #tpu.dimension_semantics<parallel>], iteration_bounds = array<i64: 1, 1>, scalar_prefetch = 0 : i64, scratch_operands = 0 : i64, tpu.core_type = #tpu.core_type<tc>, window_params = [{transform_indices = @transform_0, window_bounds = array<i64: 2, 1024>}, {transform_indices = @transform_1, window_bounds = array<i64: 2, 1024>}]} {
    %c0 = arith.constant 0 : index
    %c0_0 = arith.constant 0 : index
    %0 = vector.load %arg2[%c0, %c0_0] : memref<2x1024xf32, #tpu.memory_space<vmem>>, vector<2x1024xf32>
    %c0_1 = arith.constant 0 : index
    %c0_2 = arith.constant 0 : index
    %1 = vector.load %arg3[%c0_1, %c0_2] : memref<2x1024xf32, #tpu.memory_space<vmem>>, vector<2x1024xf32>
    tpu.vector_store %arg3[%c0_1, %c0_2], %0 {strides = array<i32>} : memref<2x1024xf32, #tpu.memory_space<vmem>>, vector<2x1024xf32>,
    return
  }
  func.func @transform_0(%arg0: i32, %arg1: i32) -> (i32, i32) {
    %c0_i32 = arith.constant 0 : i32
    return %arg0, %arg1 : i32, i32
  }
  func.func @transform_1(%arg0: i32, %arg1: i32) -> (i32, i32) {
    %c0_i32 = arith.constant 0 : i32
    return %arg0, %arg1 : i32, i32
  }
}

</mosaic_0001>

<bundles_post_ra>
// kernel: _forward_impl.1
= control target key start
LH: loop header
LB: loop body
LE: loop exit
PB: predicated region body
PF: predicated region fallthrough
CT: control target
= control target key end

     0   :  { %6 = vsyncpa [#allocation3], 0  ;;  %s116_s0 = inlined_call_operand.hbm [shape: f32[2,1024], index: 0, kind: input, shape index: {}]   ;;  %s117_s1 = inlined_call_operand.hbm [shape: f32[2,1024], index: 1, kind: output, shape index: {}]  }
   0x1   :  { %7 = vsyncpa [#allocation4], 0  ;;  %s13_s8 = sshll.u32 %s116_s0, 4  ;;  %s98_s9 = smov [#allocation2]   ;;  %s14_s8 = int_to_ptr.hbm [resolvable:$true] %s13_s8 }
   0x2   :  { %s15_s10 = sshll.u32 %s98_s9, 4  ;;  %s16_s10 = int_to_ptr.vmem [resolvable:$true] %s15_s10 }
   0x3   :  { %18 = dma.hbm_to_vmem [thread:$0]  %s14_s8, 256, %s16_s10, [#allocation3]  }
   0x4   :  { %94 = dma.done.wait [#allocation3], 256  }
   0x5   :  { %95 = vsyncadd [#allocation3], 4294967040  ;;  %s99_s11 = smov [#allocation5]   ;;  %s34_s15 = sshll.u32 %s117_s1, 4  ;;  %v23_v0 = vld [vmem:[#allocation2] sm:$0xff]  ;;  %v24_v1 = vld [vmem:[#allocation2 + $0x8] sm:$0xff]  ;;  %s35_s15 = int_to_ptr.hbm [resolvable:$true] %s34_s15 }
   0x6   :  { %s32_s12 = sshll.u32 %s99_s11, 4  ;;  %25 = vst [vmem:[#allocation5] sm:$0xff] %v23_v0  ;;  %s33_s12 = int_to_ptr.vmem [resolvable:$true] %s32_s12 }
   0x7   :  { %26 = vst [vmem:[#allocation5 + $0x8] sm:$0xff] %v24_v1 }
   0x8   :  { %37 = dma.vmem_to_hbm [thread:$0]  %s33_s12, 256, %s35_s15, [#allocation4]  }
   0x9   :  { %96 = dma.done.wait [#allocation4], 256  }
   0xa   :  { %97 = vsyncadd [#allocation4], 4294967040 }
   0xb   :  { %42 = vsyncpa [#allocation3], 1 }
   0xc   :  { %43 = vsyncpa [#allocation4], 1 }

</bundles_post_ra>
